<compile_context>
chip_gen: v6e
topology: v6e:2x2x1
jax: 0.10.0
libtpu: 0.0.40
codegen_flags: <defaults>
</compile_context>

<pallas_src>
import functools

import numpy as np
import jax
import jax.numpy as jnp
from jax.experimental import pallas as pl
from jax.experimental.pallas import tpu as pltpu

EPS = 1e-4
NEG_BIG = -1e30  # finite "minus infinity" (avoids (-inf)-(-inf) = NaN)


def _round_up(x, m):
    return ((x + m - 1) // m) * m


def _vmem_capacity_bytes():
    """Physical VMEM per TensorCore; generation-aware with a safe fallback."""
    try:
        return int(pltpu.get_tpu_info().vmem_capacity_bytes)
    except Exception:
        try:
            kind = jax.devices()[0].device_kind.lower()
        except Exception:
            kind = ""
        return 64 * 2**20 if "v7" in kind else 128 * 2**20


def _validity_mask(tn, m_pad, n_actual, m_actual, n_pad, row_offset):
    """Boolean mask of the real (unpadded) region of an (tn, m_pad) tile."""
    masks = []
    if n_actual != n_pad:
        rid = jax.lax.broadcasted_iota(jnp.int32, (tn, 1), 0) + row_offset
        masks.append(rid < n_actual)
    if m_actual != m_pad:
        cid = jax.lax.broadcasted_iota(jnp.int32, (1, m_pad), 1)
        masks.append(cid < m_actual)
    if not masks:
        return None
    valid = masks[0]
    for m in masks[1:]:
        valid = valid & m
    return valid


# ----------------------------------------------------------------------------
# Pass A: per-column softmax statistics (colmax, colsum) accumulated online
# across the row-tile grid axis.  Outputs are tiny (B, 1, Mp) arrays.
# ----------------------------------------------------------------------------
def _col_stats_kernel(sf_ref, tft_ref, colmax_ref, colsum_ref, *,
                      n_actual, m_actual, n_pad, m_pad, tn, inv_sqrt_d):
    nt = pl.program_id(1)

    sf = sf_ref[0]                       # (tn, Dp)  bf16
    tft = tft_ref[0]                     # (Dp, Mp)  bf16, contraction-dim first
    s = jnp.dot(sf, tft, preferred_element_type=jnp.float32) * inv_sqrt_d

    valid = _validity_mask(tn, m_pad, n_actual, m_actual, n_pad, nt * tn)
    if valid is not None:
        s = jnp.where(valid, s, jnp.float32(NEG_BIG))

    @pl.when(nt == 0)
    def _():
        colmax_ref[0] = jnp.full((1, m_pad), NEG_BIG, dtype=jnp.float32)
        colsum_ref[0] = jnp.zeros((1, m_pad), dtype=jnp.float32)

    old_max = colmax_ref[0]                                   # (1, Mp)
    tile_max = jnp.max(s, axis=0, keepdims=True)              # sublane reduce
    new_max = jnp.maximum(old_max, tile_max)
    e = jnp.exp(s - new_max)                                   # (tn, Mp)
    colsum_ref[0] = (colsum_ref[0] * jnp.exp(old_max - new_max)
                     + jnp.sum(e, axis=0, keepdims=True))
    colmax_ref[0] = new_max


# ----------------------------------------------------------------------------
# Pass B: recompute the tile scores, row softmax locally, column softmax with
# exact per-column stats, store the lane-dense conf tile.
#   conf = exp(s - rowmax)/rowsum * exp(s - colmax)/colsum
# rowsum, colsum >= 1 -> approx reciprocals never see 0 / inf.
# ----------------------------------------------------------------------------
def _conf_norm_kernel(sf_ref, tft_ref, colmax_ref, colsum_ref, conf_ref, *,
                      n_actual, m_actual, n_pad, m_pad, tn, inv_sqrt_d):
    nt = pl.program_id(1)

    sf = sf_ref[0]                       # (tn, Dp)  bf16
    tft = tft_ref[0]                     # (Dp, Mp)  bf16
    s = jnp.dot(sf, tft, preferred_element_type=jnp.float32) * inv_sqrt_d

    valid = _validity_mask(tn, m_pad, n_actual, m_actual, n_pad, nt * tn)
    if valid is not None:
        s = jnp.where(valid, s, jnp.float32(NEG_BIG))

    rowmax = jnp.max(s, axis=-1, keepdims=True)               # (tn, 1)
    e_row = jnp.exp(s - rowmax)
    rowsum = jnp.sum(e_row, axis=-1, keepdims=True)           # (tn, 1)  >= 1
    e_col = jnp.exp(s - colmax_ref[0])                        # per-column max

    conf = (e_row * e_col) * (pl.reciprocal(rowsum, approx=True) *
                              pl.reciprocal(colsum_ref[0], approx=True))
    if valid is not None:
        conf = jnp.where(valid, conf, 0.0)                    # padded cells -> 0
    conf_ref[0] = conf.astype(conf_ref.dtype)


def conf_matrix_from_feats(src_feats, tgt_feats, out_dtype=jnp.float32):
    """Dual-softmax confidence matrix (stand-in for matching.onnx).

    Returns the *padded* (B, Np, Mp) matrix; padded cells are exactly 0 so the
    downstream top-k / Procrustes can consume it directly (no slice copy).
    """
    B, N, D = src_feats.shape
    _, M, _ = tgt_feats.shape

    d_pad = _round_up(D, 128)            # aligned MXU contraction dim
    m_pad = _round_up(M, 128)            # lane-dense output writeback
    n_base = _round_up(N, 16)            # bf16 sublane packing

    # --- generation-aware tile sizing -------------------------------------
    out_bytes = jnp.dtype(out_dtype).itemsize
    vmem_cap = _vmem_capacity_bytes()
    budget = (vmem_cap * 3) // 8         # ~24 MiB on v7x, ~48 MiB on v5e/v6e
    fixed = 4 * d_pad * m_pad + 16 * m_pad            # tgt (bf16 x2buf) + col stats
    per_row = m_pad * (2 * out_bytes + 5 * 4) + 4 * d_pad  # out x2buf + f32 temps + src
    tn_max = max(16, (budget - fixed) // per_row)
    tn = 16
    for cand in (512, 256, 128, 64, 32, 16):
        if cand <= tn_max:
            tn = cand
            break
    tn = min(tn, n_base)                 # multiple of 16 by construction
    n_pad = _round_up(N, tn)
    n_tiles = n_pad // tn

    est_step = fixed + per_row * tn
    vmem_limit = int(min((vmem_cap * 3) // 4, max(32 * 2**20, 2 * est_step)))
    # TODO(synk): for M large enough that the full (Dp, Mp) target block does
    # not fit the budget, an additional M-tiling grid axis would be required.

    # --- input preparation (bf16 cast, zero-pad, pre-transpose the RHS) ----
    sf = src_feats.astype(jnp.bfloat16)
    tf = tgt_feats.astype(jnp.bfloat16)
    if n_pad != N or d_pad != D:
        sf = jnp.pad(sf, ((0, 0), (0, n_pad - N), (0, d_pad - D)))
    if m_pad != M or d_pad != D:
        tf = jnp.pad(tf, ((0, 0), (0, m_pad - M), (0, d_pad - D)))
    tf_t = jnp.swapaxes(tf, 1, 2)        # (B, Dp, Mp): contraction dim first

    statics = dict(n_actual=N, m_actual=M, n_pad=n_pad, m_pad=m_pad, tn=tn,
                   inv_sqrt_d=float(1.0 / np.sqrt(D)))

    # --- pass A: column statistics ----------------------------------------
    colmax, colsum = pl.pallas_call(
        functools.partial(_col_stats_kernel, **statics),
        out_shape=(jax.ShapeDtypeStruct((B, 1, m_pad), jnp.float32),
                   jax.ShapeDtypeStruct((B, 1, m_pad), jnp.float32)),
        grid=(B, n_tiles),
        in_specs=[
            pl.BlockSpec((1, tn, d_pad), lambda b, nt: (b, nt, 0)),
            pl.BlockSpec((1, d_pad, m_pad), lambda b, nt: (b, 0, 0)),
        ],
        out_specs=(
            pl.BlockSpec((1, 1, m_pad), lambda b, nt: (b, 0, 0)),
            pl.BlockSpec((1, 1, m_pad), lambda b, nt: (b, 0, 0)),
        ),
        compiler_params=pltpu.CompilerParams(
            dimension_semantics=("parallel", "arbitrary"),
            vmem_limit_bytes=vmem_limit),
    )(sf, tf_t)

    # --- pass B: normalize + store (every step independent -> all parallel) -
    conf_pad = pl.pallas_call(
        functools.partial(_conf_norm_kernel, **statics),
        out_shape=jax.ShapeDtypeStruct((B, n_pad, m_pad), out_dtype),
        grid=(B, n_tiles),
        in_specs=[
            pl.BlockSpec((1, tn, d_pad), lambda b, nt: (b, nt, 0)),
            pl.BlockSpec((1, d_pad, m_pad), lambda b, nt: (b, 0, 0)),
            pl.BlockSpec((1, 1, m_pad), lambda b, nt: (b, 0, 0)),
            pl.BlockSpec((1, 1, m_pad), lambda b, nt: (b, 0, 0)),
        ],
        out_specs=pl.BlockSpec((1, tn, m_pad), lambda b, nt: (b, nt, 0)),
        compiler_params=pltpu.CompilerParams(
            dimension_semantics=("parallel", "parallel"),
            vmem_limit_bytes=vmem_limit),
    )(sf, tf_t, colmax, colsum)

    return conf_pad


# ----------------------------------------------------------------------------
# Kernel 3: weighted-Procrustes statistics.
#   Input packed as (B, 8, k_pad):  rows 0-2 = X^T, 3-5 = Y^T, 6 = w, 7 = pad.
#   Point axis on the 128-lane axis; padded lanes carry w == 0 (no effect).
#   Grid is parallel over batch (v7x: both TensorCores).
# ----------------------------------------------------------------------------
def _procrustes_stats_kernel(p_ref, sxy_ref, mx_ref, my_ref):
    p = p_ref[0]                         # (8, k_pad) f32 — single aligned load
    x = p[0:3, :]                        # (3, k_pad)
    y = p[3:6, :]
    w = p[6:7, :]                        # (1, k_pad)

    w1 = jnp.sum(jnp.abs(w), axis=-1, keepdims=True)          # (1, 1)
    # exact divide (negligible cost) to preserve the numerics feeding the
    # host-side float64 SVD; approx reciprocal only used in the softmax kernel.
    w_norm = w * (1.0 / (w1 + EPS))

    mean_x = jnp.sum(w_norm * x, axis=-1, keepdims=True)       # (3, 1)
    mean_y = jnp.sum(w_norm * y, axis=-1, keepdims=True)

    xc = (x - mean_x) * w_norm
    yc = y - mean_y
    # tiny 3x3 cross-covariance via broadcast-multiply + lane reduction
    sxy = jnp.sum(yc[:, None, :] * xc[None, :, :], axis=-1)    # (3, 3)

    sxy_ref[0] = sxy
    mx_ref[0] = mean_x
    my_ref[0] = mean_y


def procrustes_stats(X, Y, w):
    """X, Y: (B, k, 3) float32;  w: (B, k) float32."""
    B, k, _ = X.shape
    k_pad = _round_up(max(k, 1), 128)

    packed = jnp.zeros((B, 8, k_pad), jnp.float32)
    packed = packed.at[:, 0:3, :k].set(jnp.swapaxes(X.astype(jnp.float32), 1, 2))
    packed = packed.at[:, 3:6, :k].set(jnp.swapaxes(Y.astype(jnp.float32), 1, 2))
    packed = packed.at[:, 6, :k].set(w.astype(jnp.float32))

    return pl.pallas_call(
        _procrustes_stats_kernel,
        out_shape=(
            jax.ShapeDtypeStruct((B, 3, 3), jnp.float32),
            jax.ShapeDtypeStruct((B, 3, 1), jnp.float32),
            jax.ShapeDtypeStruct((B, 3, 1), jnp.float32),
        ),
        grid=(B,),
        in_specs=[pl.BlockSpec((1, 8, k_pad), lambda b: (b, 0, 0))],
        out_specs=(
            pl.BlockSpec((1, 3, 3), lambda b: (b, 0, 0)),
            pl.BlockSpec((1, 3, 1), lambda b: (b, 0, 0)),
            pl.BlockSpec((1, 3, 1), lambda b: (b, 0, 0)),
        ),
        compiler_params=pltpu.CompilerParams(
            dimension_semantics=("parallel",)),
    )(packed)


# ----------------------------------------------------------------------------
# SoftProcrustesLayer (glue in JAX/NumPy, hot path in the Pallas kernels above)
# ----------------------------------------------------------------------------
class SoftProcrustes:
    def __init__(self, sample_rate=0.5, max_condition_num=1e3):
        self.sample_rate = sample_rate
        self.max_condition_num = max_condition_num

    def __call__(self, conf_padded, src_pcd, tgt_pcd, n_actual=None, m_actual=None):
        B, n_pad, m_pad = conf_padded.shape
        N = n_actual if n_actual is not None else n_pad
        M = m_actual if m_actual is not None else m_pad

        # no src_mask/tgt_mask -> entry_max = max(N, M) * sample_rate
        entry_max = int(max(N, M) * self.sample_rate)
        sample_n = entry_max                       # mean of a length-1 tensor

        # top-k directly on the padded matrix (padded cells are exactly 0),
        # decode with m_pad -> no slice copy of the largest HBM buffer.
        flat = conf_padded.reshape(B, -1)
        w, idx = jax.lax.top_k(flat, sample_n)     # (B, k)
        w = w.astype(jnp.float32)
        idx_src = jnp.minimum(idx // m_pad, N - 1)
        idx_tgt = jnp.minimum(idx % m_pad, M - 1)

        b_index = jnp.arange(B)[:, None]
        X = src_pcd[b_index, idx_src]              # (B, k, 3)
        Y = tgt_pcd[b_index, idx_tgt]              # (B, k, 3)

        w_mask = jnp.arange(sample_n)[None, :] < entry_max     # all True here
        w = jnp.where(w_mask, w, 0.0)

        sxy, mean_x, mean_y = procrustes_stats(X, Y, w)

        # host-side double-precision SVD, like the reference (`Sxy.cpu().double()`)
        sxy_np = np.asarray(sxy).astype(np.float64)
        U, Dg, Vh = np.linalg.svd(sxy_np)
        condition = Dg.max(axis=1) / Dg.min(axis=1)
        uv_det = np.linalg.det(U) * np.linalg.det(Vh)          # det(V) == det(Vh)
        S = np.tile(np.eye(3, dtype=np.float64), (B, 1, 1))
        S[:, 2, 2] = uv_det
        R = (U @ (S @ Vh)).astype(np.float32)                  # (B, 3, 3)

        mean_x = np.asarray(mean_x)                            # (B, 3, 1)
        mean_y = np.asarray(mean_y)                            # (B, 3, 1)
        t = mean_y - R @ mean_x                                # (B, 3, 1)

        solution_mask = condition < self.max_condition_num
        R_forwd = np.where(solution_mask[:, None, None], R,
                           np.eye(3, dtype=np.float32))
        t_forwd = np.where(solution_mask[:, None, None], t,
                           np.zeros((3, 1), dtype=np.float32))
        return R, t, R_forwd, t_forwd, condition, solution_mask


# ----------------------------------------------------------------------------
# Pipeline (SoftProcrustes branch).
# ----------------------------------------------------------------------------
class PallasPipeline:
    def __init__(self, sample_rate=0.5, max_condition_num=1e3):
        self.soft_procrustes = SoftProcrustes(sample_rate, max_condition_num)
        # TODO(synk): backbone.onnx / transformer.onnx (KPConv + transformer),
        # cpp_subsampling/cpp_neighbors preprocessing and the Open3D RANSAC
        # branch have no Pallas equivalent and are not reproduced here.

    def get_transformation(self, src_feats, tgt_feats, s_pcd, t_pcd):
        B, N, _ = src_feats.shape
        _, M, _ = tgt_feats.shape
        conf_pad = conf_matrix_from_feats(src_feats, tgt_feats)   # Pallas kernels
        # hot path consumes the padded matrix directly (no slice copy)
        R, t, _, _, _, _ = self.soft_procrustes(conf_pad, s_pcd, t_pcd,
                                                n_actual=N, m_actual=M)
        pred = np.tile(np.eye(4, dtype=np.float32), (B, 1, 1))
        pred[:, :3, :3] = R
        pred[:, :3, 3:4] = t
        # the unpadded view is only built for the user-facing return value
        conf = conf_pad[:, :N, :M]
        return conf, pred


# ----------------------------------------------------------------------------
# Pure-JAX references for tolerance checks
# ----------------------------------------------------------------------------
def _conf_ref(src_feats, tgt_feats):
    sf = src_feats.astype(jnp.bfloat16)
    tf = tgt_feats.astype(jnp.bfloat16)
    s = jnp.einsum("bnd,bmd->bnm", sf, tf,
                   preferred_element_type=jnp.float32)
    s = s / jnp.sqrt(jnp.float32(src_feats.shape[-1]))
    return jax.nn.softmax(s, axis=-1) * jax.nn.softmax(s, axis=-2)


def _procrustes_ref(X, Y, w):          # X, Y: (B,k,3)  w: (B,k,1)
    w1 = jnp.sum(jnp.abs(w), axis=1, keepdims=True)
    w_norm = w / (w1 + EPS)
    mean_x = jnp.sum(w_norm * X, axis=1, keepdims=True)
    mean_y = jnp.sum(w_norm * Y, axis=1, keepdims=True)
    sxy = jnp.einsum("bni,bnj->bij", Y - mean_y, w_norm * (X - mean_x))
    return sxy, mean_x, mean_y


if __name__ == "__main__":
    key = jax.random.PRNGKey(0)
    B, N, M, D = 2, 16, 16, 32

    k1, k2, k3, k4 = jax.random.split(key, 4)
    s_pcd = jax.random.normal(k1, (B, N, 3), dtype=jnp.float32)
    t_pcd = jax.random.normal(k2, (B, M, 3), dtype=jnp.float32)
    src_feats = jax.random.normal(k3, (B, N, D), dtype=jnp.float32)
    tgt_feats = jax.random.normal(k4, (B, M, D), dtype=jnp.float32)

    pipeline = PallasPipeline(sample_rate=0.5, max_condition_num=1e3)
    conf, pred = pipeline.get_transformation(src_feats, tgt_feats, s_pcd, t_pcd)
    jax.block_until_ready(conf)

    # correctness checks against pure-JAX references
    conf_ref = np.asarray(_conf_ref(src_feats, tgt_feats))
    np.testing.assert_allclose(np.asarray(conf), conf_ref, rtol=1e-2, atol=1e-2)

    kk = int(max(N, M) * 0.5)
    wv, idx = jax.lax.top_k(jnp.asarray(conf).reshape(B, -1), kk)
    bi = jnp.arange(B)[:, None]
    Xr = s_pcd[bi, idx // M]
    Yr = t_pcd[bi, idx % M]
    sxy_ref, mx_ref, my_ref = _procrustes_ref(Xr, Yr, wv[..., None])
    sxy_k, mx_k, my_k = procrustes_stats(Xr, Yr, wv)
    np.testing.assert_allclose(np.asarray(sxy_k), np.asarray(sxy_ref),
                               rtol=1e-4, atol=1e-4)
    np.testing.assert_allclose(np.asarray(mx_k)[:, :, 0],
                               np.asarray(mx_ref)[:, 0, :], rtol=1e-4, atol=1e-4)
    np.testing.assert_allclose(np.asarray(my_k)[:, :, 0],
                               np.asarray(my_ref)[:, 0, :], rtol=1e-4, atol=1e-4)

    assert conf.shape == (B, N, M)
    assert pred.shape == (B, 4, 4)
    assert np.all(np.isfinite(np.asarray(conf)))
    assert np.all(np.isfinite(pred))
    print("KERNEL_OK")
</pallas_src>

<mosaic_0001>
module attributes {stable_mosaic.version = 11 : i64} {
  func.func @_col_stats_kernel(%arg0: i32, %arg1: i32, %arg2: memref<1x16x128xbf16, #tpu.memory_space<vmem>>, %arg3: memref<1x128x128xbf16, #tpu.memory_space<vmem>>, %arg4: memref<1x1x128xf32, #tpu.memory_space<vmem>>, %arg5: memref<1x1x128xf32, #tpu.memory_space<vmem>>) attributes {dimension_semantics = [#tpu.dimension_semantics<parallel>, #tpu.dimension_semantics<arbitrary>], iteration_bounds = array<i64: 2, 1>, scalar_prefetch = 0 : i64, scratch_operands = 0 : i64, tpu.core_type = #tpu.core_type<tc>, window_params = [{transform_indices = @transform_0, window_bounds = array<i64: 1, 16, 128>}, {transform_indices = @transform_1, window_bounds = array<i64: 1, 128, 128>}, {transform_indices = @transform_2, window_bounds = array<i64: 1, 1, 128>}, {transform_indices = @transform_3, window_bounds = array<i64: 1, 1, 128>}]} {
    %c0 = arith.constant 0 : index
    %c0_0 = arith.constant 0 : index
    %c0_1 = arith.constant 0 : index
    %0 = vector.load %arg2[%c0, %c0_0, %c0_1] : memref<1x16x128xbf16, #tpu.memory_space<vmem>>, vector<1x16x128xbf16>
    %1 = vector.shape_cast %0 : vector<1x16x128xbf16> to vector<16x128xbf16>
    %c0_2 = arith.constant 0 : index
    %c0_3 = arith.constant 0 : index
    %c0_4 = arith.constant 0 : index
    %2 = vector.load %arg3[%c0_2, %c0_3, %c0_4] : memref<1x128x128xbf16, #tpu.memory_space<vmem>>, vector<1x128x128xbf16>
    %3 = vector.shape_cast %2 : vector<1x128x128xbf16> to vector<128x128xbf16>
    %cst = arith.constant dense<0.000000e+00> : vector<16x128xf32>
    %4 = tpu.matmul %1, %3, %cst {dimension_numbers = #tpu.dot_dimension_numbers<[1], [0], [0], [1], [0, 0, 1, 1], [], []>} : vector<16x128xbf16>, vector<128x128xbf16>, vector<16x128xf32> -> vector<16x128xf32>
    %cst_5 = arith.constant 0.176776692 : f32
    %5 = vector.broadcast %cst_5 : f32 to vector<16x128xf32>
    %6 = arith.mulf %4, %5 : vector<16x128xf32>
    %7 = tpu.iota {dimensions = array<i32: 1>} : vector<1x128xi32>
    %c16_i32 = arith.constant 16 : i32
    %8 = vector.broadcast %c16_i32 : i32 to vector<1x128xi32>
    %9 = arith.cmpi slt, %7, %8 : vector<1x128xi32>
    %cst_6 = arith.constant -1.000000e+30 : f32
    %10 = vector.shape_cast %9 : vector<1x128xi1> to vector<1x128xi1>
    %11 = vector.broadcast %10 : vector<1x128xi1> to vector<16x128xi1>
    %12 = vector.broadcast %cst_6 : f32 to vector<16x128xf32>
    %13 = arith.select %11, %6, %12 : vector<16x128xi1>, vector<16x128xf32>
    %c0_i32 = arith.constant 0 : i32
    %14 = arith.cmpi eq, %arg1, %c0_i32 : i32
    %15 = arith.extui %14 : i1 to i32
    %c0_i32_7 = arith.constant 0 : i32
    %16 = arith.cmpi ne, %15, %c0_i32_7 : i32
    scf.if %16 {
      %cst_22 = arith.constant -1.000000e+30 : f32
      %39 = vector.broadcast %cst_22 : f32 to vector<1x128xf32>
      %c0_23 = arith.constant 0 : index
      %c0_24 = arith.constant 0 : index
      %c0_25 = arith.constant 0 : index
      %40 = vector.load %arg4[%c0_23, %c0_24, %c0_25] : memref<1x1x128xf32, #tpu.memory_space<vmem>>, vector<1x1x128xf32>
      %41 = vector.shape_cast %40 : vector<1x1x128xf32> to vector<1x128xf32>
      %42 = vector.shape_cast %39 : vector<1x128xf32> to vector<1x1x128xf32>
      tpu.vector_store %arg4[%c0_23, %c0_24, %c0_25], %42 {strides = array<i32>} : memref<1x1x128xf32, #tpu.memory_space<vmem>>, vector<1x1x128xf32>,
      %cst_26 = arith.constant 0.000000e+00 : f32
      %43 = vector.broadcast %cst_26 : f32 to vector<1x128xf32>
      %c0_27 = arith.constant 0 : index
      %c0_28 = arith.constant 0 : index
      %c0_29 = arith.constant 0 : index
      %44 = vector.load %arg5[%c0_27, %c0_28, %c0_29] : memref<1x1x128xf32, #tpu.memory_space<vmem>>, vector<1x1x128xf32>
      %45 = vector.shape_cast %44 : vector<1x1x128xf32> to vector<1x128xf32>
      %46 = vector.shape_cast %43 : vector<1x128xf32> to vector<1x1x128xf32>
      tpu.vector_store %arg5[%c0_27, %c0_28, %c0_29], %46 {strides = array<i32>} : memref<1x1x128xf32, #tpu.memory_space<vmem>>, vector<1x1x128xf32>,
    } else {
    }
    %c0_8 = arith.constant 0 : index
    %c0_9 = arith.constant 0 : index
    %c0_10 = arith.constant 0 : index
    %17 = vector.load %arg4[%c0_8, %c0_9, %c0_10] : memref<1x1x128xf32, #tpu.memory_space<vmem>>, vector<1x1x128xf32>
    %18 = vector.shape_cast %17 : vector<1x1x128xf32> to vector<1x128xf32>
    %cst_11 = arith.constant dense<0xFF800000> : vector<128xf32>
    %19 = vector.multi_reduction <maximumf>, %13, %cst_11 [0] : vector<16x128xf32> to vector<128xf32>
    %20 = vector.shape_cast %19 : vector<128xf32> to vector<1x128xf32>
    %21 = arith.maximumf %18, %20 : vector<1x128xf32>
    %22 = vector.broadcast %21 : vector<1x128xf32> to vector<16x128xf32>
    %23 = arith.subf %13, %22 : vector<16x128xf32>
    %24 = math.exp %23 : vector<16x128xf32>
    %c0_12 = arith.constant 0 : index
    %c0_13 = arith.constant 0 : index
    %c0_14 = arith.constant 0 : index
    %25 = vector.load %arg5[%c0_12, %c0_13, %c0_14] : memref<1x1x128xf32, #tpu.memory_space<vmem>>, vector<1x1x128xf32>
    %26 = vector.shape_cast %25 : vector<1x1x128xf32> to vector<1x128xf32>
    %27 = arith.subf %18, %21 : vector<1x128xf32>
    %28 = math.exp %27 : vector<1x128xf32>
    %29 = arith.mulf %26, %28 : vector<1x128xf32>
    %cst_15 = arith.constant dense<0.000000e+00> : vector<128xf32>
    %30 = vector.multi_reduction <add>, %24, %cst_15 [0] : vector<16x128xf32> to vector<128xf32>
    %31 = vector.shape_cast %30 : vector<128xf32> to vector<1x128xf32>
    %32 = arith.addf %29, %31 : vector<1x128xf32>
    %c0_16 = arith.constant 0 : index
    %c0_17 = arith.constant 0 : index
    %c0_18 = arith.constant 0 : index
    %33 = vector.load %arg5[%c0_16, %c0_17, %c0_18] : memref<1x1x128xf32, #tpu.memory_space<vmem>>, vector<1x1x128xf32>
    %34 = vector.shape_cast %33 : vector<1x1x128xf32> to vector<1x128xf32>
    %35 = vector.shape_cast %32 : vector<1x128xf32> to vector<1x1x128xf32>
    tpu.vector_store %arg5[%c0_16, %c0_17, %c0_18], %35 {strides = array<i32>} : memref<1x1x128xf32, #tpu.memory_space<vmem>>, vector<1x1x128xf32>,
    %c0_19 = arith.constant 0 : index
    %c0_20 = arith.constant 0 : index
    %c0_21 = arith.constant 0 : index
    %36 = vector.load %arg4[%c0_19, %c0_20, %c0_21] : memref<1x1x128xf32, #tpu.memory_space<vmem>>, vector<1x1x128xf32>
    %37 = vector.shape_cast %36 : vector<1x1x128xf32> to vector<1x128xf32>
    %38 = vector.shape_cast %21 : vector<1x128xf32> to vector<1x1x128xf32>
    tpu.vector_store %arg4[%c0_19, %c0_20, %c0_21], %38 {strides = array<i32>} : memref<1x1x128xf32, #tpu.memory_space<vmem>>, vector<1x1x128xf32>,
    return
  }
  func.func @transform_0(%arg0: i32, %arg1: i32) -> (i32, i32, i32) {
    %c0_i32 = arith.constant 0 : i32
    %c0_i32_0 = arith.constant 0 : i32
    return %arg0, %arg1, %c0_i32 : i32, i32, i32
  }
  func.func @transform_1(%arg0: i32, %arg1: i32) -> (i32, i32, i32) {
    %c0_i32 = arith.constant 0 : i32
    %c0_i32_0 = arith.constant 0 : i32
    %c0_i32_1 = arith.constant 0 : i32
    return %arg0, %c0_i32, %c0_i32_0 : i32, i32, i32
  }
  func.func @transform_2(%arg0: i32, %arg1: i32) -> (i32, i32, i32) {
    %c0_i32 = arith.constant 0 : i32
    %c0_i32_0 = arith.constant 0 : i32
    %c0_i32_1 = arith.constant 0 : i32
    return %arg0, %c0_i32, %c0_i32_0 : i32, i32, i32
  }
  func.func @transform_3(%arg0: i32, %arg1: i32) -> (i32, i32, i32) {
    %c0_i32 = arith.constant 0 : i32
    %c0_i32_0 = arith.constant 0 : i32
    %c0_i32_1 = arith.constant 0 : i32
    return %arg0, %c0_i32, %c0_i32_0 : i32, i32, i32
  }
}

</mosaic_0001>

<bundles_post_ra>
// kernel: tpu_custom_call.1
= control target key start
LH: loop header
LB: loop body
LE: loop exit
PB: predicated region body
PF: predicated region fallthrough
CT: control target
= control target key end

     0   :  { %s1133_s0 = inlined_call_operand.hbm [shape: bf16[2,16,128], index: 0, kind: input, shape index: {}]   ;;  %s1134_s1 = inlined_call_operand.hbm [shape: bf16[2,128,128], index: 1, kind: input, shape index: {}]   ;;  %s1135_s2 = inlined_call_operand.hbm [shape: f32[2,1,128], index: 2, kind: output, shape index: {0}]   ;;  %s1136_s3 = inlined_call_operand.hbm [shape: f32[2,1,128], index: 3, kind: output, shape index: {1}]  }
   0x1   :  { %1137 = sst [smem:[#allocation14_spill]] %s1133_s0 }
   0x2   :  { %9 = vsyncpa [#allocation3], 0 }
   0x3   :  { %11 = vsyncpa [#allocation3 + $0x1], 0 }
   0x4   :  { %12 = vsyncpa [#allocation6], 0 }
   0x5   :  { %14 = vsyncpa [#allocation6 + $0x1], 0 }
   0x6   :  { %15 = vsyncpa [#allocation4], 0 }
   0x7   :  { %17 = vsyncpa [#allocation4 + $0x1], 0 }
   0x8   :  { %18 = vsyncpa [#allocation9], 0 }
   0x9   :  { %20 = vsyncpa [#allocation9 + $0x1], 0  ;;  %s928_s12 = smov 0   ;;  %s930_s13 = smov 0  }
   0xa   :  { %s932_s14 = smov 0   ;;  %s934_s15 = smov 0  }
   0xb   :  { %s936_s16 = smov 0   ;;  %s938_s17 = smov 0  }
   0xc LB: > { %s578_s18 = sadd.s32 4294967295, %s897_s17   ;;  %s579_s19 = sadd.s32 4294967294, %s897_s17   ;;  %s897_s17 = sphi %s938_s17, %s26_s17   ;;  %s893_s16 = sphi %s936_s16, %s1150_s16   ;;  %s889_s15 = sphi %s934_s15, %s1149_s15   ;;  %s885_s14 = sphi %s932_s14, %s1148_s14   ;;  %s881_s13 = sphi %s930_s13, %s1147_s13   ;;  %s877_s12 = sphi %s928_s12, %s1146_s12  }
   0xd   : > { %s38_s20 = sadd.s32 1, %s893_s16  ;;  %s47_s21 = sadd.s32 1, %s885_s14 }
   0xe   : > { %p40_p0 = scmp.ge.s32.totalorder %s38_s20, 2  ;;  %p54_p1 = scmp.ne.s32.totalorder %s885_s14, %s881_s13 }
   0xf   : > { %p55_p2 = scmp.eq.s32.totalorder %s897_s17, 0  ;;  %p60_p3 = scmp.ne.s32.totalorder %s881_s13, %s877_s12 }
  0x10   : > { %s1152_s20 = smov (%p40_p0, %s38_s20), 0  ;;  %p61_p5 = scmp.eq.s32.totalorder %s578_s18, 0 }
  0x11   : > { %p969_p4 = por %p55_p2, %p54_p1  ;;  %s42_s23 = ssub.s32 %s893_s16, %s1152_s20 }
  0x12   : > { %p110_p6 = scmp.eq.s32.totalorder %s578_s18, 1  ;;  %p45_p7 = scmp.eq.s32.totalorder %s42_s23, 0 }
  0x13   : > { %p975_p8 = por %p61_p5, %p60_p3  ;;  %p116_p10 = scmp.eq.s32.totalorder %s579_s19, 1 }
  0x14   : > { %p979_p9 = por %p110_p6, %p54_p1  ;;  %p657_p13 = scmp.lt.s32.totalorder %s897_s17, 2 }
  0x15   : > { %s984_s26 = scalar_select %p45_p7, %s885_s14, %s47_s21  }
  0x16   : > { %p986_p11 = por %p116_p10, %p60_p3  ;;  %s993_s28 = sand.u32 1, %s885_s14  }
  0x17   : > { %s582_s29 = sshll.u32 %s993_s28, 3  ;;  %s604_s30 = sshll.u32 %s893_s16, 7 }
  0x18   : > { %s1142_s0 = sld [smem:[#allocation14_spill]]  ;;  %s166_s7 = scalar_lea.vmem [#allocation2], %s582_s29 }
  0x19   : > { %s175_s8 = sshll.u32 %s166_s7, 4  ;;  %p1002_p0 = pnand %p657_p13, %p969_p4  ;;  %s176_s8 = int_to_ptr.vmem [resolvable:$true] %s175_s8 }
  0x1a   : > { %p588_p1 = scmp.ge.s32.totalorder %s897_s17, 1  ;;  %s163_s10 = scalar_lea.sflag [#allocation3], %s993_s28 }
  0x1b   : > { %p729_p2 = pneg %p1002_p0  ;;  %s740_s11 = scalar_lea.vmem %s176_s8, 128 }
  0x1c   : > { %p741_p3 = scmp.ne.s32.totalorder %s176_s8, %s740_s11  ;;  %s899_s18 = smov [#allocation2]  }
  0x1d   : > { %s745_s19 = sshll.u32 %s899_s18, 4  ;;  %s746_s19 = int_to_ptr.vmem [resolvable:$false] %s745_s19 }
  0x1e   : > { %s174_s6 = scalar_lea.hbm %s1142_s0, %s604_s30  ;;  %p743_p5 = pnand %p741_p3, %p729_p2 }
  0x1f   : > { %s747_s21 = scalar_lea.vmem %s746_s19, 256  ;;  %p748_p4 = scmp.lt.s32.totalorder %s176_s8, %s746_s19 }
  0x20   : > { %p744_p6 = pneg %p743_p5  ;;  %p749_p7 = scmp.lt.s32.totalorder %s747_s21, %s740_s11 }
  0x22   : > { %p750_p10 = por %p749_p7, %p748_p4 }
  0x24   : > { %p751_p13 = pnand %p750_p10, %p744_p6 }
  0x26   : > { %754 = shalt.err (!%p751_p13)
}
  0x27   : > { %s900_s22 = smov 64   ;;  %s901_s23 = smov 4  }
  0x28   : > { %646 = dma.hbm_to_vmem [thread:$0]  (!%p1002_p0), %s174_s6, 128, %s176_s8, %s163_s10, %s900_s22, %s900_s22, %s901_s23  }
  0x29   : > { %p204_p3 = scmp.lt.s32.totalorder %s897_s17, 3  ;;  %s585_s29 = sshll.u32 %s993_s28, 6 }
  0x2a   : > { %s605_s30 = sshll.u32 %s893_s16, 10  ;;  %s189_s18 = scalar_lea.vmem [#allocation5], %s585_s29 }
  0x2b   : > { %p1020_p5 = pnand %p588_p1, %p204_p3  ;;  %s195_s11 = scalar_lea.hbm %s1134_s1, %s605_s30 }
  0x2c   : > { %s196_s19 = sshll.u32 %s189_s18, 4  ;;  %s186_s21 = scalar_lea.sflag [#allocation6], %s993_s28  ;;  %s197_s19 = int_to_ptr.vmem [resolvable:$true] %s196_s19 }
  0x2d   : > { %s768_s0 = scalar_lea.vmem %s197_s19, 1024  ;;  %s902_s6 = smov [#allocation5]  }
  0x2e   : > { %p769_p6 = scmp.ne.s32.totalorder %s197_s19, %s768_s0  ;;  %s773_s8 = sshll.u32 %s902_s6, 4  ;;  %s774_s8 = int_to_ptr.vmem [resolvable:$false] %s773_s8 }
  0x2f   : > { %s775_s10 = scalar_lea.vmem %s774_s8, 2048  ;;  %p776_p1 = scmp.lt.s32.totalorder %s197_s19, %s774_s8 }
  0x30   : > { %p771_p4 = pnand %p769_p6, %p729_p2  ;;  %p777_p10 = scmp.lt.s32.totalorder %s775_s10, %s768_s0 }
  0x32   : > { %p772_p7 = pneg %p771_p4  ;;  %p778_p13 = por %p777_p10, %p776_p1 }
  0x34   : > { %p779_p3 = pnand %p778_p13, %p772_p7 }
  0x36   : > { %782 = shalt.err (!%p779_p3)
}
  0x37   : > { %649 = dma.hbm_to_vmem [thread:$0]  (!%p1002_p0), %s195_s11, 1024, %s197_s19, %s186_s21, %s900_s22, %s900_s22, %s901_s23  }
  0x38   : > { %208 = sbr.rel (%p1020_p5) target bundleno = 374 (0x176), region = 28  ;;  %s1036_s28 = sand.u32 (!%p1020_p5), 1, %s881_s13  }
  0x39   : > { %s589_s29 = sshll.u32 (!%p1020_p5), %s1036_s28, 3  ;;  %s211_s30 = scalar_lea.sflag (!%p1020_p5), [#allocation3], %s1036_s28 }
  0x3a   : > { %s1040_s5 = scalar_lea.vmem (!%p1020_p5), [#allocation2], %s589_s29 }
  0x3d   : > { %860 = dma.done.wait (%p975_p8), %s211_s30, 128  }
  0x3e   : > { %862 = vsyncadd (%p975_p8), %s211_s30, 4294967168  ;;  %s590_s0 = sshll.u32 %s1036_s28, 6  ;;  %s220_s9 = scalar_lea.sflag [#allocation6], %s1036_s28 }
  0x3f   : > { %s223_s22 = scalar_lea.vmem [#allocation5], %s590_s0 }
  0x40   : > { %864 = dma.done.wait (%p975_p8), %s220_s9, 1024  }
  0x41   : > { %866 = vsyncadd (%p975_p8), %s220_s9, 4294966272  ;;  %v903_v0 = vmov 0.0   ;;  %vm904_vm0 = vmmov 0   ;;  %v712_v1 = vld [vmem:[%s223_s22 + $0x38] sm:$0xff]   ;;  %v713_v2 = vld [vmem:[%s223_s22 + $0x30] sm:$0xff]   ;;  %s1054_s24 = scalar_lea.vmem [#allocation7], %s1036_s28  ;;  %v371_v11 = vlaneseq }
  0x42   : > { %615 = vmatprep.subr.bf16.mxu0 %v903_v0  ;;  %631 = vmatprep.mubr.msk.bf16.mxu0 %vm904_vm0, %v903_v0  ;;  %v714_v3 = vld [vmem:[%s223_s22 + $0x28] sm:$0xff]   ;;  %v715_v4 = vld [vmem:[%s223_s22 + $0x20] sm:$0xff]   ;;  %v716_v5 = vld [vmem:[%s223_s22 + $0x18] sm:$0xff]   ;;  %v905_v10 = vmov -1e+30   ;;  %s1058_s23 = scalar_lea.vmem [#allocation8], %s1036_s28 }
  0x43   : > { %616 = vmatpush3.bf16.msra.mxu0 %v712_v1  ;;  %v717_v6 = vld [vmem:[%s223_s22 + $0x10] sm:$0xff]   ;;  %v718_v7 = vld [vmem:[%s223_s22 + $0x8] sm:$0xff]   ;;  %v719_v8 = vld [vmem:[%s223_s22] sm:$0xff]   ;;  %382 = vst [vmem:[%s1054_s24] sm:$0x1] %v905_v10  ;;  %v372_v13 = vand.u32 127, %v371_v11  ;;  %v395_v26 = vshrl.u32 %v371_v11, 7 }
  0x44   : > { %617 = vmatprep.subr.bf16.mxu0 %v903_v0  ;;  %v720_v9 = vld [vmem:[%s1040_s5] sm:$0xff]   ;;  %383 = vst [vmem:[%s1058_s23] sm:$0x1] %v903_v0  ;;  %s600_s4 = sshll.u32 %s889_s15, 4  ;;  %s437_s7 = sshll.u32 %s1054_s24, 4  ;;  %s438_s7 = int_to_ptr.vmem [resolvable:$true] %s437_s7 }
  0x45   : > { %vm373_vm1 = vcmp.lt.s32.totalorder %v372_v13, 16  ;;  %v396_v30 = vsub.s32 0, %v395_v26  ;;  %s1069_s19 = scalar_lea.hbm %s1135_s2, %s600_s4  ;;  %s421_s21 = scalar_lea.sflag [#allocation4], %s1036_s28 }
  0x46   : > { %s783_s6 = scalar_lea.vmem %s438_s7, 16  ;;  %s906_s8 = smov [#allocation7]  }
  0x47   : > { %618 = vmatpush3.bf16.msra.mxu0 %v713_v2  ;;  %p784_p8 = scmp.ne.s32.totalorder %s438_s7, %s783_s6  ;;  %s787_s10 = sshll.u32 %s906_s8, 4  ;;  %s788_s10 = int_to_ptr.vmem [resolvable:$false] %s787_s10 }
  0x48   : > { %619 = vmatprep.subr.bf16.mxu0 %v903_v0  ;;  %s789_s29 = scalar_lea.vmem %s788_s10, 32  ;;  %p790_p5 = scmp.lt.s32.totalorder %s438_s7, %s788_s10 }
  0x49   : > { %p785_p0 = pnand %p784_p8, %p979_p9  ;;  %p791_p6 = scmp.lt.s32.totalorder %s789_s29, %s783_s6 }
  0x4a   : > { %v384_v28 = vld [vmem:[%s1054_s24] sm:$0x1] }
  0x4b   : > { %620 = vmatpush3.bf16.msra.mxu0 %v714_v3  ;;  %p786_p2 = pneg %p785_p0  ;;  %p792_p4 = por %p791_p6, %p790_p5 }
  0x4c   : > { %621 = vmatprep.subr.bf16.mxu0 %v903_v0 }
  0x4d   : > { %p793_p7 = pnand %p792_p4, %p786_p2 }
  0x4f   : > { %622 = vmatpush3.bf16.msra.mxu0 %v715_v4 }
  0x50   : > { %623 = vmatprep.subr.bf16.mxu0 %v903_v0 }
  0x53   : > { %624 = vmatpush3.bf16.msra.mxu0 %v716_v5 }
  0x54   : > { %625 = vmatprep.subr.bf16.mxu0 %v903_v0 }
  0x57   : > { %626 = vmatpush3.bf16.msra.mxu0 %v717_v6 }
  0x58   : > { %627 = vmatprep.subr.bf16.mxu0 %v903_v0 }
  0x5b   : > { %628 = vmatpush3.bf16.msra.mxu0 %v718_v7 }
  0x5c   : > { %629 = vmatprep.subr.bf16.mxu0 %v903_v0 }
  0x5f   : > { %630 = vmatpush3.bf16.msra.mxu0 %v719_v8 }
  0x62   : > { %632 = vmatmul.mubr.bf16.vlgmr.msra.gmra.mxu0 %v720_v9 }
 0x122   : > { %v362_v12 = vpop.f32.mrf.mxu0 }
 0x123   : > { %v369_v15 = vmul.f32 0.17677669, %v362_v12 }
 0x124   : > { %v633_v14 = vpop.f32.mrf.mxu0 }
 0x125   : > { %v376_v19 = vsel %vm373_vm1, %v369_v15, -1e+30 }
 0x126   : > { %v365_v16 = vpop.f32.mrf.mxu0 }
 0x127   : > { %v370_v17 = vmul.f32 0.17677669, %v365_v16 }
 0x128   : > { %v634_v18 = vpop.f32.mrf.mxu0 }
 0x129   : > { %v377_v20 = vsel %vm373_vm1, %v370_v17, -1e+30 }
 0x12a   : > { %v385_v21 = vmax.f32 %v376_v19, %v377_v20 }
 0x12c   : > { %v386_v22 = vrot.slane %v385_v21, 4 }
 0x12e   : > { %v387_v23 = vmax.f32 %v385_v21, %v386_v22 }
 0x130   : > { %v388_v24 = vrot.slane %v387_v23, 2 }
 0x132   : > { %v389_v25 = vmax.f32 %v387_v23, %v388_v24 }
 0x134   : > { %v390_v27 = vrot.slane %v389_v25, 1 }
 0x136   : > { %v391_v29 = vmax.f32 %v389_v25, %v390_v27 }
 0x138   : > { %v392_v31 = vmax.f32 %v384_v28, %v391_v29 }
 0x13a   : > { %v397_v32 = vrot.slane %v392_v31, %v396_v30  ;;  %419 = vst [vmem:[%s1054_s24] sm:$0x1] %v392_v31 }
 0x13b   : > { %796 = shalt.err (!%p793_p7)
}
 0x13c   : > { %s797_s30 = scalar_lea.hbm %s1069_s19, 16  ;;  %s801_s9 = scalar_lea.hbm %s1135_s2, 32 }
 0x13d   : > { %p798_p1 = scmp.ne.s32.totalorder %s1069_s19, %s797_s30  ;;  %p802_p3 = scmp.lt.s32.totalorder %s1069_s19, %s1135_s2 }
 0x13e   : > { %p803_p8 = scmp.lt.s32.totalorder %s801_s9, %s797_s30 }
 0x13f   : > { %p799_p10 = pnand %p798_p1, %p979_p9 }
 0x140   : > { %p804_p0 = por %p803_p8, %p802_p3 }
 0x141   : > { %p800_p13 = pneg %p799_p10 }
 0x143   : > { %p805_p2 = pnand %p804_p0, %p800_p13 }
 0x145   : > { %808 = shalt.err (!%p805_p2)
}
 0x146   : > { %639 = dma.vmem_to_hbm [thread:$0]  (%p979_p9), %s438_s7, 16, %s1069_s19, %s421_s21   ;;  %v399_v33 = vsub.f32 %v376_v19, %v397_v32  ;;  %v400_v34 = vsub.f32 %v377_v20, %v397_v32  ;;  %v406_v37 = vsub.f32 %v384_v28, %v392_v31  ;;  %v405_v47 = vld [vmem:[%s1058_s23] sm:$0x1] }
 0x147   : > { %s450_s7 = sshll.u32 %s1058_s23, 4  ;;  %s448_s19 = scalar_lea.hbm %s1136_s3, %s600_s4  ;;  %s451_s7 = int_to_ptr.vmem [resolvable:$true] %s450_s7 }
 0x148   : > { %v401_v35 = vmul.f32 1.442695, %v399_v33  ;;  %v403_v36 = vmul.f32 1.442695, %v400_v34  ;;  %v407_v38 = vmul.f32 1.442695, %v406_v37 }
 0x149   : > { %s425_s21 = scalar_lea.sflag [#allocation9], %s1036_s28  ;;  %s809_s6 = scalar_lea.vmem %s451_s7, 16 }
 0x14a   : > { %721 = vpow2.f32 %v401_v35  ;;  %p810_p5 = scmp.ne.s32.totalorder %s451_s7, %s809_s6  ;;  %s907_s8 = smov [#allocation8]  }
 0x14b   : > { %723 = vpow2.f32 %v403_v36  ;;  %s813_s10 = sshll.u32 %s907_s8, 4  ;;  %s814_s10 = int_to_ptr.vmem [resolvable:$false] %s813_s10 }
 0x14c   : > { %725 = vpow2.f32 %v407_v38  ;;  %p811_p6 = pnand %p810_p5, %p979_p9  ;;  %s815_s29 = scalar_lea.vmem %s814_s10, 32 }
 0x14d   : > { %p816_p7 = scmp.lt.s32.totalorder %s451_s7, %s814_s10  ;;  %p817_p1 = scmp.lt.s32.totalorder %s815_s29, %s809_s6 }
 0x14e   : > { %p812_p4 = pneg %p811_p6 }
 0x14f   : > { %p818_p10 = por %p817_p1, %p816_p7 }
 0x151   : > { %p819_p13 = pnand %p818_p10, %p812_p4 }
 0x157   : > { %v722_v39 = vpop.eup %721 }
 0x158   : > { %v724_v40 = vpop.eup %723 }
 0x159   : > { %v410_v41 = vadd.f32 %v724_v40, %v722_v39  ;;  %v726_v46 = vpop.eup %725 }
 0x15a   : > { %v409_v49 = vmul.f32 %v726_v46, %v405_v47 }
 0x15b   : > { %v411_v42 = vrot.slane %v410_v41, 4 }
 0x15d   : > { %v412_v43 = vadd.f32 %v411_v42, %v410_v41 }
 0x15f   : > { %v413_v44 = vrot.slane %v412_v43, 2 }
 0x161   : > { %v414_v45 = vadd.f32 %v413_v44, %v412_v43 }
 0x163   : > { %v415_v48 = vrot.slane %v414_v45, 1 }
 0x165   : > { %v416_v50 = vadd.f32 %v415_v48, %v414_v45 }
 0x167   : > { %v417_v51 = vadd.f32 %v416_v50, %v409_v49 }
 0x169   : > { %418 = vst [vmem:[%s1058_s23] sm:$0x1] %v417_v51 }
 0x16a   : > { %822 = shalt.err (!%p819_p13)
}
 0x16b   : > { %s823_s15 = scalar_lea.hbm %s448_s19, 16  ;;  %s827_s4 = scalar_lea.hbm %s1136_s3, 32 }
 0x16c   : > { %p824_p3 = scmp.ne.s32.totalorder %s448_s19, %s823_s15  ;;  %p828_p2 = scmp.lt.s32.totalorder %s448_s19, %s1136_s3 }
 0x16d   : > { %p829_p5 = scmp.lt.s32.totalorder %s827_s4, %s823_s15 }
 0x16e   : > { %p825_p8 = pnand %p824_p3, %p979_p9 }
 0x16f   : > { %p830_p6 = por %p829_p5, %p828_p2 }
 0x170   : > { %p826_p0 = pneg %p825_p8 }
 0x172   : > { %p831_p12 = pnand %p830_p6, %p826_p0 }
 0x174   : > { %834 = shalt.err (!%p831_p12)
}
 0x175   : > { %640 = dma.vmem_to_hbm [thread:$0]  (%p979_p9), %s451_s7, 16, %s448_s19, %s425_s21  }
 0x176 PF: > { %s462_s0 = sand.u32 1, %s877_s12   ;;  %p1145_p4 = scmp.ge.s32.totalorder %s897_s17, 2 }
 0x177   : > { %s463_s9 = scalar_lea.sflag [#allocation4], %s462_s0 }
 0x178   : > { %p651_p7 = pnand %p1145_p4, %p986_p11 }
 0x17a   : > { %p652_p1 = pneg %p651_p7 }
 0x17c   : > { %868 = dma.done.wait (%p652_p1), %s463_s9, 16  }
 0x17d   : > { %870 = vsyncadd (%p652_p1), %s463_s9, 4294967280  ;;  %s471_s22 = scalar_lea.sflag [#allocation9], %s462_s0 }
 0x17e   : > { %872 = dma.done.wait (%p652_p1), %s471_s22, 16  }
 0x17f   : > { %874 = vsyncadd (%p652_p1), %s471_s22, 4294967280  ;;  %s26_s17 = sadd.s32 1, %s897_s17   ;;  %s1146_s12 = smov %s881_s13 }
 0x180   : > { %p23_p12 = scmp.ge.s32.totalorder %s26_s17, 4   ;;  %s1147_s13 = smov %s885_s14 }
 0x181   : > { %s1148_s14 = smov %s984_s26  ;;  %s1149_s15 = smov %s893_s16 }
 0x182   : > { %s1150_s16 = smov %s1152_s20  ;;  %25 = sbr.rel (!%p23_p12) target bundleno = 12 (0xc), region = 107 }
 0x187   :  { %475 = vsyncpa [#allocation3], 1 }
 0x188   :  { %477 = vsyncpa [#allocation3 + $0x1], 1 }
 0x189   :  { %478 = vsyncpa [#allocation6], 1 }
 0x18a   :  { %480 = vsyncpa [#allocation6 + $0x1], 1 }
 0x18b   :  { %481 = vsyncpa [#allocation4], 1 }
 0x18c   :  { %483 = vsyncpa [#allocation4 + $0x1], 1 }
 0x18d   :  { %484 = vsyncpa [#allocation9], 1 }
 0x18e   :  { %486 = vsyncpa [#allocation9 + $0x1], 1 }

</bundles_post_ra>
